<compile_context>
chip_gen: v7x
topology: tpu7x:2x2x1
jax: 0.10.0
libtpu: 0.0.40
codegen_flags: <defaults>
</compile_context>

<pallas_src>
import functools

import jax
import jax.numpy as jnp
from jax.experimental import pallas as pl
from jax.experimental.pallas import tpu as pltpu

NEG_SLOPE = 0.01   # F.leaky_relu default negative slope
DROP_P = 0.5       # dropout probability


def _round_up(x, m):
    return (x + m - 1) // m * m


def _leaky_relu(x):
    return jnp.where(x > 0, x, NEG_SLOPE * x)


def _dropout_mask(shape, row0, seed, salt, keep_prob):
    """Counter-based PRNG -> f32 mask with values in {0, 1/keep_prob}.

    Keyed on (global_row, col, seed, salt) so it is deterministic, tiling
    invariant, and different per layer / per batch tile.  Uses only portable
    integer ops so it lowers both on Mosaic TPU and in interpret mode.
    """
    r = (jax.lax.broadcasted_iota(jnp.int32, shape, 0) + row0).astype(jnp.uint32)
    c = jax.lax.broadcasted_iota(jnp.int32, shape, 1).astype(jnp.uint32)
    x = (r * jnp.uint32(2654435761)
         + c * jnp.uint32(97780813)
         + seed.astype(jnp.uint32)
         + jnp.uint32(salt))
    # murmur3-style finalizer
    x = x ^ (x >> 16)
    x = x * jnp.uint32(2146121005)   # 0x7FEB352D
    x = x ^ (x >> 15)
    x = x * jnp.uint32(2221668491)   # 0x846CA68B
    x = x ^ (x >> 16)
    # 31-bit threshold compare (generalizes to any keep_prob, avoids relying
    # on a single LSB).
    bits31 = (x & jnp.uint32(0x7FFFFFFF)).astype(jnp.int32)
    thr = jnp.int32(min(int(keep_prob * 2147483648.0), 2147483647))
    return jnp.where(bits31 < thr,
                     jnp.float32(1.0 / keep_prob), jnp.float32(0.0))


def generator_kernel(seed_ref,           # SMEM scalar-prefetch: [1] int32
                     x_ref,              # [TB, in_p]    f32
                     w1_ref, b1_ref,     # [in_p, dim_p] bf16, [1, dim_p] f32
                     w4_ref, b4_ref,     # [dim_p, dim_p] bf16, [1, dim_p] f32
                     w5_ref, b5_ref,     # [dim_p, out_p] bf16, [1, out_p] f32
                     o_ref,              # [TB, out_p]   f32
                     *, training=True):
    tb = x_ref.shape[0]
    row0 = pl.program_id(0) * tb          # global row offset for this tile
    seed = seed_ref[0]
    keep_prob = 1.0 - DROP_P

    # --- fc_1 -> leaky_relu -> dropout (bf16 MXU operands, f32 accumulate) ---
    h = jnp.dot(x_ref[...].astype(jnp.bfloat16), w1_ref[...],
                preferred_element_type=jnp.float32) + b1_ref[...]
    h = _leaky_relu(h)
    if training:
        h = h * _dropout_mask(h.shape, row0, seed, 0x1B56C4E9, keep_prob)

    # --- fc_4 -> leaky_relu -> dropout ---
    h = jnp.dot(h.astype(jnp.bfloat16), w4_ref[...],
                preferred_element_type=jnp.float32) + b4_ref[...]
    h = _leaky_relu(h)
    if training:
        h = h * _dropout_mask(h.shape, row0, seed, 0x60BEE2D7, keep_prob)

    # --- fc_5 (no activation) ---
    out = jnp.dot(h.astype(jnp.bfloat16), w5_ref[...],
                  preferred_element_type=jnp.float32) + b5_ref[...]
    o_ref[...] = out.astype(o_ref.dtype)


def _pad2(a, rows, cols, dtype):
    out = jnp.zeros((rows, cols), dtype)
    return out.at[:a.shape[0], :a.shape[1]].set(a.astype(dtype))


def generator_forward(noise, params, seed, *, training=True, batch_tile=256):
    """noise: [B, input_width] f32; params: dict of f32 weights ([in,out]) and
    biases ([out]); seed: python int controlling the dropout mask."""
    w1, b1, w4, b4, w5, b5 = (params["w1"], params["b1"], params["w4"],
                              params["b4"], params["w5"], params["b5"])
    B, in_w = noise.shape
    dim = w1.shape[1]
    out_w = w5.shape[1]

    # Lane-dense feature dims (multiples of 128); zero padding keeps math exact.
    in_p = _round_up(in_w, 128)
    dim_p = _round_up(dim, 128)
    out_p = _round_up(out_w, 128)

    # Batch tile: multiple of 16 (bf16 sublane packing); pad B to a tile multiple.
    tb = min(batch_tile, _round_up(B, 16))
    b_p = _round_up(B, tb)

    x_p = jnp.zeros((b_p, in_p), jnp.float32).at[:B, :in_w].set(
        noise.astype(jnp.float32))
    w1_p = _pad2(w1, in_p, dim_p, jnp.bfloat16)
    w4_p = _pad2(w4, dim_p, dim_p, jnp.bfloat16)
    w5_p = _pad2(w5, dim_p, out_p, jnp.bfloat16)
    b1_p = _pad2(b1.reshape(1, -1), 1, dim_p, jnp.float32)
    b4_p = _pad2(b4.reshape(1, -1), 1, dim_p, jnp.float32)
    b5_p = _pad2(b5.reshape(1, -1), 1, out_p, jnp.float32)

    seed_arr = jnp.array([seed], dtype=jnp.int32)

    # index_maps receive (grid_idx, *scalar_prefetch_refs).
    def batch_map(i, seed_ref):
        return (i, 0)

    def const_map(i, seed_ref):
        return (0, 0)

    # VMEM budget: resident bf16 weights + double-buffered in/out tiles + headroom.
    weight_bytes = 2 * (in_p * dim_p + dim_p * dim_p + dim_p * out_p)
    bias_bytes = 4 * (2 * dim_p + out_p)
    io_bytes = 2 * 4 * tb * (in_p + out_p)           # double-buffered batch tiles
    tmp_bytes = 6 * 4 * tb * max(dim_p, out_p)       # hidden temporaries
    vmem_limit = int(min(max(weight_bytes + bias_bytes + io_bytes + tmp_bytes
                             + (8 << 20), 32 << 20), 64 << 20))

    out_padded = pl.pallas_call(
        functools.partial(generator_kernel, training=training),
        out_shape=jax.ShapeDtypeStruct((b_p, out_p), jnp.float32),
        grid_spec=pltpu.PrefetchScalarGridSpec(
            num_scalar_prefetch=1,
            grid=(b_p // tb,),
            in_specs=[
                pl.BlockSpec((tb, in_p), batch_map),      # x       (streamed)
                pl.BlockSpec((in_p, dim_p), const_map),   # w1      (resident)
                pl.BlockSpec((1, dim_p), const_map),      # b1
                pl.BlockSpec((dim_p, dim_p), const_map),  # w4
                pl.BlockSpec((1, dim_p), const_map),      # b4
                pl.BlockSpec((dim_p, out_p), const_map),  # w5
                pl.BlockSpec((1, out_p), const_map),      # b5
            ],
            out_specs=pl.BlockSpec((tb, out_p), batch_map),
        ),
        compiler_params=pltpu.CompilerParams(
            dimension_semantics=("parallel",),            # megacore on v7x
            vmem_limit_bytes=vmem_limit,
        ),
    )(seed_arr, x_p, w1_p, b1_p, w4_p, b4_p, w5_p, b5_p)

    return out_padded[:B, :out_w]


def init_params(key, input_width, output_width, dimensionality):
    """nn.Linear-style init (uniform +/- 1/sqrt(fan_in)); weights stored
    pre-transposed as [in, out], biases as [out]."""
    ks = jax.random.split(key, 6)

    def lin(kw, kb, fan_in, fan_out):
        bound = 1.0 / jnp.sqrt(jnp.float32(fan_in))
        w = jax.random.uniform(kw, (fan_in, fan_out), jnp.float32, -bound, bound)
        b = jax.random.uniform(kb, (fan_out,), jnp.float32, -bound, bound)
        return w, b

    w1, b1 = lin(ks[0], ks[1], input_width, dimensionality)
    w4, b4 = lin(ks[2], ks[3], dimensionality, dimensionality)
    w5, b5 = lin(ks[4], ks[5], dimensionality, output_width)
    return {"w1": w1, "b1": b1, "w4": w4, "b4": b4, "w5": w5, "b5": b5}


if __name__ == "__main__":
    key = jax.random.PRNGKey(0)
    k_noise, k_params = jax.random.split(key)

    # Small shapes consistent with the module: Linear-only MLP on 2D input.
    batch = 8
    input_width = 16
    dimensionality = 32
    output_width = 16

    noise = jax.random.normal(k_noise, (batch, input_width), dtype=jnp.float32)
    params = init_params(k_params, input_width, output_width, dimensionality)

    # 1) Deterministic check with dropout disabled against a pure-JAX reference
    #    (bf16-rounded weights to mirror the kernel's MXU operand dtype).
    out_eval = jax.block_until_ready(
        generator_forward(noise, params, seed=0, training=False))

    def ref_eval(x, p):
        lr = lambda v: jnp.where(v > 0, v, NEG_SLOPE * v)
        cast = lambda w: w.astype(jnp.bfloat16).astype(jnp.float32)
        h = lr(x @ cast(p["w1"]) + p["b1"].reshape(1, -1))
        h = lr(h @ cast(p["w4"]) + p["b4"].reshape(1, -1))
        return h @ cast(p["w5"]) + p["b5"].reshape(1, -1)

    ref = ref_eval(noise, params)
    assert out_eval.shape == (batch, output_width)
    assert out_eval.dtype == jnp.float32
    assert bool(jnp.allclose(out_eval, ref, rtol=5e-2, atol=5e-2)), (
        "max abs err", float(jnp.max(jnp.abs(out_eval - ref))))

    # 2) Module-default semantics (F.dropout training=True): shape/finite check
    #    only — dropout mask cannot bit-match PyTorch's RNG.
    out_train = jax.block_until_ready(
        generator_forward(noise, params, seed=1234, training=True))
    assert out_train.shape == (batch, output_width)
    assert bool(jnp.all(jnp.isfinite(out_train)))

    print("KERNEL_OK")
</pallas_src>

<mosaic_0001>
module attributes {stable_mosaic.version = 11 : i64} {
  func.func @generator_kernel(%arg0: i32, %arg1: memref<1xi32, #tpu.memory_space<smem>>, %arg2: memref<16x128xf32, #tpu.memory_space<vmem>>, %arg3: memref<128x128xbf16, #tpu.memory_space<vmem>>, %arg4: memref<1x128xf32, #tpu.memory_space<vmem>>, %arg5: memref<128x128xbf16, #tpu.memory_space<vmem>>, %arg6: memref<1x128xf32, #tpu.memory_space<vmem>>, %arg7: memref<128x128xbf16, #tpu.memory_space<vmem>>, %arg8: memref<1x128xf32, #tpu.memory_space<vmem>>, %arg9: memref<16x128xf32, #tpu.memory_space<vmem>>) attributes {dimension_semantics = [#tpu.dimension_semantics<parallel>], iteration_bounds = array<i64: 1>, scalar_prefetch = 1 : i64, scratch_operands = 0 : i64, tpu.core_type = #tpu.core_type<tc>, window_params = [{transform_indices = @transform_0, window_bounds = array<i64: 16, 128>}, {pipeline_mode = #tpu.pipeline_mode<synchronous>, transform_indices = @transform_1, window_bounds = array<i64: 128, 128>}, {pipeline_mode = #tpu.pipeline_mode<synchronous>, transform_indices = @transform_2, window_bounds = array<i64: 1, 128>}, {pipeline_mode = #tpu.pipeline_mode<synchronous>, transform_indices = @transform_3, window_bounds = array<i64: 128, 128>}, {pipeline_mode = #tpu.pipeline_mode<synchronous>, transform_indices = @transform_4, window_bounds = array<i64: 1, 128>}, {pipeline_mode = #tpu.pipeline_mode<synchronous>, transform_indices = @transform_5, window_bounds = array<i64: 128, 128>}, {pipeline_mode = #tpu.pipeline_mode<synchronous>, transform_indices = @transform_6, window_bounds = array<i64: 1, 128>}, {transform_indices = @transform_7, window_bounds = array<i64: 16, 128>}]} {
    %c0 = arith.constant 0 : index
    %c0_0 = arith.constant 0 : index
    %0 = vector.load %arg2[%c0, %c0_0] : memref<16x128xf32, #tpu.memory_space<vmem>>, vector<16x128xf32>
    %1 = arith.truncf %0 : vector<16x128xf32> to vector<16x128xbf16>
    %c0_1 = arith.constant 0 : index
    %c0_2 = arith.constant 0 : index
    %2 = vector.load %arg3[%c0_1, %c0_2] : memref<128x128xbf16, #tpu.memory_space<vmem>>, vector<128x128xbf16>
    %cst = arith.constant dense<0.000000e+00> : vector<16x128xf32>
    %3 = tpu.matmul %1, %2, %cst {dimension_numbers = #tpu.dot_dimension_numbers<[1], [0], [0], [1], [0, 0, 1, 1], [], []>} : vector<16x128xbf16>, vector<128x128xbf16>, vector<16x128xf32> -> vector<16x128xf32>
    %c0_3 = arith.constant 0 : index
    %c0_4 = arith.constant 0 : index
    %4 = vector.load %arg4[%c0_3, %c0_4] : memref<1x128xf32, #tpu.memory_space<vmem>>, vector<1x128xf32>
    %5 = vector.broadcast %4 : vector<1x128xf32> to vector<16x128xf32>
    %6 = arith.addf %3, %5 : vector<16x128xf32>
    %cst_5 = arith.constant 0.000000e+00 : f32
    %7 = vector.broadcast %cst_5 : f32 to vector<16x128xf32>
    %8 = arith.cmpf ogt, %6, %7 : vector<16x128xf32>
    %cst_6 = arith.constant 0.00999999977 : f32
    %9 = vector.broadcast %cst_6 : f32 to vector<16x128xf32>
    %10 = arith.mulf %9, %6 : vector<16x128xf32>
    %11 = arith.select %8, %6, %10 : vector<16x128xi1>, vector<16x128xf32>
    %12 = arith.truncf %11 : vector<16x128xf32> to vector<16x128xbf16>
    %c0_7 = arith.constant 0 : index
    %c0_8 = arith.constant 0 : index
    %13 = vector.load %arg5[%c0_7, %c0_8] : memref<128x128xbf16, #tpu.memory_space<vmem>>, vector<128x128xbf16>
    %cst_9 = arith.constant dense<0.000000e+00> : vector<16x128xf32>
    %14 = tpu.matmul %12, %13, %cst_9 {dimension_numbers = #tpu.dot_dimension_numbers<[1], [0], [0], [1], [0, 0, 1, 1], [], []>} : vector<16x128xbf16>, vector<128x128xbf16>, vector<16x128xf32> -> vector<16x128xf32>
    %c0_10 = arith.constant 0 : index
    %c0_11 = arith.constant 0 : index
    %15 = vector.load %arg6[%c0_10, %c0_11] : memref<1x128xf32, #tpu.memory_space<vmem>>, vector<1x128xf32>
    %16 = vector.broadcast %15 : vector<1x128xf32> to vector<16x128xf32>
    %17 = arith.addf %14, %16 : vector<16x128xf32>
    %cst_12 = arith.constant 0.000000e+00 : f32
    %18 = vector.broadcast %cst_12 : f32 to vector<16x128xf32>
    %19 = arith.cmpf ogt, %17, %18 : vector<16x128xf32>
    %cst_13 = arith.constant 0.00999999977 : f32
    %20 = vector.broadcast %cst_13 : f32 to vector<16x128xf32>
    %21 = arith.mulf %20, %17 : vector<16x128xf32>
    %22 = arith.select %19, %17, %21 : vector<16x128xi1>, vector<16x128xf32>
    %23 = arith.truncf %22 : vector<16x128xf32> to vector<16x128xbf16>
    %c0_14 = arith.constant 0 : index
    %c0_15 = arith.constant 0 : index
    %24 = vector.load %arg7[%c0_14, %c0_15] : memref<128x128xbf16, #tpu.memory_space<vmem>>, vector<128x128xbf16>
    %cst_16 = arith.constant dense<0.000000e+00> : vector<16x128xf32>
    %25 = tpu.matmul %23, %24, %cst_16 {dimension_numbers = #tpu.dot_dimension_numbers<[1], [0], [0], [1], [0, 0, 1, 1], [], []>} : vector<16x128xbf16>, vector<128x128xbf16>, vector<16x128xf32> -> vector<16x128xf32>
    %c0_17 = arith.constant 0 : index
    %c0_18 = arith.constant 0 : index
    %26 = vector.load %arg8[%c0_17, %c0_18] : memref<1x128xf32, #tpu.memory_space<vmem>>, vector<1x128xf32>
    %27 = vector.broadcast %26 : vector<1x128xf32> to vector<16x128xf32>
    %28 = arith.addf %25, %27 : vector<16x128xf32>
    %c0_19 = arith.constant 0 : index
    %c0_20 = arith.constant 0 : index
    %29 = vector.load %arg9[%c0_19, %c0_20] : memref<16x128xf32, #tpu.memory_space<vmem>>, vector<16x128xf32>
    tpu.vector_store %arg9[%c0_19, %c0_20], %28 {strides = array<i32>} : memref<16x128xf32, #tpu.memory_space<vmem>>, vector<16x128xf32>,
    return
  }
  func.func @transform_0(%arg0: i32, %arg1: memref<1xi32, #tpu.memory_space<smem>>) -> (i32, i32) {
    %c0_i32 = arith.constant 0 : i32
    %c0_i32_0 = arith.constant 0 : i32
    return %arg0, %c0_i32 : i32, i32
  }
  func.func @transform_1(%arg0: i32, %arg1: memref<1xi32, #tpu.memory_space<smem>>) -> (i32, i32) {
    %c0_i32 = arith.constant 0 : i32
    %c0_i32_0 = arith.constant 0 : i32
    %c0_i32_1 = arith.constant 0 : i32
    return %c0_i32, %c0_i32_0 : i32, i32
  }
  func.func @transform_2(%arg0: i32, %arg1: memref<1xi32, #tpu.memory_space<smem>>) -> (i32, i32) {
    %c0_i32 = arith.constant 0 : i32
    %c0_i32_0 = arith.constant 0 : i32
    %c0_i32_1 = arith.constant 0 : i32
    return %c0_i32, %c0_i32_0 : i32, i32
  }
  func.func @transform_3(%arg0: i32, %arg1: memref<1xi32, #tpu.memory_space<smem>>) -> (i32, i32) {
    %c0_i32 = arith.constant 0 : i32
    %c0_i32_0 = arith.constant 0 : i32
    %c0_i32_1 = arith.constant 0 : i32
    return %c0_i32, %c0_i32_0 : i32, i32
  }
  func.func @transform_4(%arg0: i32, %arg1: memref<1xi32, #tpu.memory_space<smem>>) -> (i32, i32) {
    %c0_i32 = arith.constant 0 : i32
    %c0_i32_0 = arith.constant 0 : i32
    %c0_i32_1 = arith.constant 0 : i32
    return %c0_i32, %c0_i32_0 : i32, i32
  }
  func.func @transform_5(%arg0: i32, %arg1: memref<1xi32, #tpu.memory_space<smem>>) -> (i32, i32) {
    %c0_i32 = arith.constant 0 : i32
    %c0_i32_0 = arith.constant 0 : i32
    %c0_i32_1 = arith.constant 0 : i32
    return %c0_i32, %c0_i32_0 : i32, i32
  }
  func.func @transform_6(%arg0: i32, %arg1: memref<1xi32, #tpu.memory_space<smem>>) -> (i32, i32) {
    %c0_i32 = arith.constant 0 : i32
    %c0_i32_0 = arith.constant 0 : i32
    %c0_i32_1 = arith.constant 0 : i32
    return %c0_i32, %c0_i32_0 : i32, i32
  }
  func.func @transform_7(%arg0: i32, %arg1: memref<1xi32, #tpu.memory_space<smem>>) -> (i32, i32) {
    %c0_i32 = arith.constant 0 : i32
    %c0_i32_0 = arith.constant 0 : i32
    return %arg0, %c0_i32 : i32, i32
  }
}

</mosaic_0001>

<bundles_post_ra>
// kernel: tpu_custom_call.1
= control target key start
LH: loop header
LB: loop body
LE: loop exit
PB: predicated region body
PF: predicated region fallthrough
CT: control target
= control target key end

     0   :  { %14 = vsyncpa [#allocation5], 0  ;;  %s903_s0 = inlined_call_operand.<no memory space> [shape: s32[1], index: 0, kind: input, shape index: {}]   ;;  %s904_s1 = inlined_call_operand.hbm [shape: f32[16,128], index: 1, kind: input, shape index: {}]   ;;  %s905_s2 = inlined_call_operand.hbm [shape: bf16[128,128], index: 2, kind: input, shape index: {}]   ;;  %s906_s3 = inlined_call_operand.vmem [shape: f32[1,128], index: 3, kind: input, shape index: {}]   ;;  %s907_s4 = inlined_call_operand.hbm [shape: bf16[128,128], index: 4, kind: input, shape index: {}]   ;;  %s908_s5 = inlined_call_operand.vmem [shape: f32[1,128], index: 5, kind: input, shape index: {}]   ;;  %s909_s6 = inlined_call_operand.hbm [shape: bf16[128,128], index: 6, kind: input, shape index: {}]   ;;  %s910_s7 = inlined_call_operand.vmem [shape: f32[1,128], index: 7, kind: input, shape index: {}]   ;;  %s911_s8 = inlined_call_operand.hbm [shape: f32[16,128], index: 8, kind: output, shape index: {}]  }
   0x1   :  { %15 = vsyncpa [#allocation8], 0 }
   0x2   :  { %16 = vsyncpa [#allocation11], 0 }
   0x3   :  { %17 = vsyncpa [#allocation6], 0  ;;  %s726_s26 = smov [#allocation7]   ;;  %s608_s30 = scalar_lea.hbm %s905_s2, 1024 }
   0x4   :  { %s35_s27 = sshll.u32 %s726_s26, 4  ;;  %p609_p0 = scmp.ne.s32.totalorder %s905_s2, %s608_s30  ;;  %s36_s27 = int_to_ptr.vmem [resolvable:$true] %s35_s27 }
   0x5   :  { %p612_p1 = scmp.lt.u32.totalorder %s608_s30, %s905_s2 }
   0x7   :  { %p614_p2 = pnand %p612_p1, %p609_p0 }
   0x9   :  { %617 = shalt.err (!%p614_p2)
}
   0xa   :  { %s618_s13 = scalar_lea.vmem %s36_s27, 1024  ;;  %p623_p4 = scmp.lt.s32.totalorder %s36_s27, %s36_s27 }
   0xb   :  { %p619_p3 = scmp.ne.s32.totalorder %s36_s27, %s618_s13  ;;  %p624_p5 = scmp.lt.s32.totalorder %s618_s13, %s618_s13 }
   0xd   :  { %p625_p6 = por %p624_p5, %p623_p4 }
   0xf   :  { %p626_p7 = pnand %p625_p6, %p619_p3 }
  0x11   :  { %629 = shalt.err (!%p626_p7)
}
  0x12   :  { %s727_s14 = smov 64   ;;  %s728_s15 = smov 4  }
  0x13   :  { %41 = dma.hbm_to_vmem [thread:$0]  %s905_s2, 1024, %s36_s27, [#allocation8], %s727_s14, %s727_s14, %s728_s15  }
  0x14   :  { %s729_s18 = smov [#allocation4]   ;;  %s630_s22 = scalar_lea.hbm %s904_s1, 256 }
  0x15   :  { %s23_s19 = sshll.u32 %s729_s18, 4  ;;  %p631_p8 = scmp.ne.s32.totalorder %s904_s1, %s630_s22  ;;  %s24_s19 = int_to_ptr.vmem [resolvable:$true] %s23_s19 }
  0x16   :  { %p634_p9 = scmp.lt.u32.totalorder %s630_s22, %s904_s1 }
  0x18   :  { %p636_p10 = pnand %p634_p9, %p631_p8 }
  0x1a   :  { %639 = shalt.err (!%p636_p10)
}
  0x1b   :  { %s640_s26 = scalar_lea.vmem %s24_s19, 256  ;;  %p645_p12 = scmp.lt.s32.totalorder %s24_s19, %s24_s19 }
  0x1c   :  { %p641_p11 = scmp.ne.s32.totalorder %s24_s19, %s640_s26  ;;  %p646_p13 = scmp.lt.s32.totalorder %s640_s26, %s640_s26 }
  0x1e   :  { %p647_p0 = por %p646_p13, %p645_p12 }
  0x20   :  { %p648_p1 = pnand %p647_p0, %p641_p11 }
  0x22   :  { %651 = shalt.err (!%p648_p1)
}
  0x23   :  { %s730_s2 = smov 128   ;;  %s731_s27 = smov 8  }
  0x24   :  { %29 = dma.hbm_to_vmem [thread:$0]  %s904_s1, 256, %s24_s19, [#allocation5], %s730_s2, %s730_s2, %s731_s27  }
  0x25   :  { %s732_s30 = smov [#allocation9]   ;;  %s733_s10 = smov [#allocation10]  }
  0x26   :  { %s49_s9 = sshll.u32 %s732_s30, 4  ;;  %s63_s11 = sshll.u32 %s733_s10, 4  ;;  %s50_s9 = int_to_ptr.vmem [resolvable:$true] %s49_s9  ;;  %s812_s11 = int_to_ptr.vmem [resolvable:$true] %s63_s11 }
  0x27   :  { %s652_s16 = scalar_lea.hbm %s907_s4, 1024 }
  0x28   :  { %p653_p2 = scmp.ne.s32.totalorder %s907_s4, %s652_s16  ;;  %p656_p3 = scmp.lt.u32.totalorder %s652_s16, %s907_s4 }
  0x2a   :  { %p658_p4 = pnand %p656_p3, %p653_p2 }
  0x2c   :  { %661 = shalt.err (!%p658_p4)
}
  0x2d   :  { %s662_s1 = scalar_lea.vmem %s50_s9, 1024  ;;  %p667_p6 = scmp.lt.s32.totalorder %s50_s9, %s50_s9 }
  0x2e   :  { %p663_p5 = scmp.ne.s32.totalorder %s50_s9, %s662_s1  ;;  %p668_p7 = scmp.lt.s32.totalorder %s662_s1, %s662_s1 }
  0x30   :  { %p669_p8 = por %p668_p7, %p667_p6 }
  0x32   :  { %p670_p9 = pnand %p669_p8, %p663_p5 }
  0x34   :  { %673 = shalt.err (!%p670_p9)
}
  0x35   :  { %55 = dma.hbm_to_vmem [thread:$0]  %s907_s4, 1024, %s50_s9, [#allocation8], %s727_s14, %s727_s14, %s728_s15  }
  0x36   :  { %s674_s24 = scalar_lea.hbm %s909_s6, 1024 }
  0x37   :  { %p675_p10 = scmp.ne.s32.totalorder %s909_s6, %s674_s24  ;;  %p678_p11 = scmp.lt.u32.totalorder %s674_s24, %s909_s6 }
  0x39   :  { %p680_p12 = pnand %p678_p11, %p675_p10 }
  0x3b   :  { %683 = shalt.err (!%p680_p12)
}
  0x3c   :  { %s684_s30 = scalar_lea.vmem %s812_s11, 1024  ;;  %p689_p0 = scmp.lt.s32.totalorder %s812_s11, %s812_s11 }
  0x3d   :  { %p685_p13 = scmp.ne.s32.totalorder %s812_s11, %s684_s30  ;;  %p690_p1 = scmp.lt.s32.totalorder %s684_s30, %s684_s30 }
  0x3f   :  { %p691_p2 = por %p690_p1, %p689_p0 }
  0x41   :  { %p692_p3 = pnand %p691_p2, %p685_p13 }
  0x43   :  { %695 = shalt.err (!%p692_p3)
}
  0x44   :  { %69 = dma.hbm_to_vmem [thread:$0]  %s909_s6, 1024, %s812_s11, [#allocation11], %s727_s14, %s727_s14, %s728_s15  }
  0x45   :  { %718 = dma.done.wait [#allocation5], 256  }
  0x46   :  { %719 = vsyncadd [#allocation5], 4294967040 }
  0x47   :  { %720 = dma.done.wait [#allocation8], 2048  }
  0x48   :  { %721 = vsyncadd [#allocation8], 4294965248 }
  0x49   :  { %722 = dma.done.wait [#allocation11], 1024  }
  0x4a   :  { %723 = vsyncadd [#allocation11], 4294966272  ;;  %v734_v0 = vmov 0.0   ;;  %vm735_vm0 = vmmov 0   ;;  %v584_v1 = vld [vmem:[#allocation7] sm:$0xff]   ;;  %v585_v2 = vld [vmem:[#allocation7 + $0x8] sm:$0xff]  }
  0x4b   :  { %513 = vmatprep.subr.bf16.mxu0 %v734_v0  ;;  %529 = vmatprep.mubr.msk.bf16.mxu0 %vm735_vm0, %v734_v0  ;;  %v586_v3 = vld [vmem:[#allocation7 + $0x10] sm:$0xff]   ;;  %v592_v4 = vld [vmem:[#allocation9] sm:$0xff]   ;;  %v587_v5 = vld [vmem:[#allocation7 + $0x18] sm:$0xff]  }
  0x4c   :  { %533 = vmatprep.subr.bf16.mxu1 %v734_v0  ;;  %549 = vmatprep.mubr.msk.bf16.mxu1 %vm735_vm0, %v734_v0  ;;  %v593_v6 = vld [vmem:[#allocation9 + $0x8] sm:$0xff]   ;;  %v588_v7 = vld [vmem:[#allocation7 + $0x20] sm:$0xff]   ;;  %v594_v8 = vld [vmem:[#allocation9 + $0x10] sm:$0xff]  }
  0x4d   :  { %514 = vmatpush3.bf16.msra.mxu0 %v584_v1  ;;  %534 = vmatpush3.bf16.msra.mxu1 %v592_v4  ;;  %v589_v9 = vld [vmem:[#allocation7 + $0x28] sm:$0xff]   ;;  %v595_v10 = vld [vmem:[#allocation9 + $0x18] sm:$0xff]   ;;  %v590_v11 = vld [vmem:[#allocation7 + $0x30] sm:$0xff]  }
  0x4e   :  { %515 = vmatprep.subr.bf16.mxu0 %v734_v0  ;;  %535 = vmatprep.subr.bf16.mxu1 %v734_v0  ;;  %v596_v12 = vld [vmem:[#allocation9 + $0x20] sm:$0xff]   ;;  %v591_v13 = vld [vmem:[#allocation7 + $0x38] sm:$0xff]   ;;  %v85_v14 = vld [vmem:[#allocation4] sm:$0xff] }
  0x4f   :  { %v86_v15 = vld [vmem:[#allocation4 + $0x8] sm:$0xff]  ;;  %v597_v16 = vld [vmem:[#allocation9 + $0x28] sm:$0xff]   ;;  %v598_v18 = vld [vmem:[#allocation9 + $0x30] sm:$0xff]  }
  0x50   :  { %v87_v17 = vpack.c.bf16 %v86_v15, %v85_v14  ;;  %v599_v19 = vld [vmem:[#allocation9 + $0x38] sm:$0xff]   ;;  %v600_v20 = vld [vmem:[#allocation10] sm:$0xff]   ;;  %v601_v21 = vld [vmem:[#allocation10 + $0x8] sm:$0xff]  }
  0x51   :  { %516 = vmatpush3.bf16.msra.mxu0 %v585_v2  ;;  %536 = vmatpush3.bf16.msra.mxu1 %v593_v6  ;;  %v602_v22 = vld [vmem:[#allocation10 + $0x10] sm:$0xff]   ;;  %v603_v23 = vld [vmem:[#allocation10 + $0x18] sm:$0xff]   ;;  %v604_v24 = vld [vmem:[#allocation10 + $0x20] sm:$0xff]  }
  0x52   :  { %517 = vmatprep.subr.bf16.mxu0 %v734_v0  ;;  %537 = vmatprep.subr.bf16.mxu1 %v734_v0  ;;  %v605_v25 = vld [vmem:[#allocation10 + $0x28] sm:$0xff]   ;;  %v459_v26 = vld [vmem:[%s906_s3] ss:$0 sm:$0xff]  ;;  %v607_v39 = vld [vmem:[#allocation10 + $0x38] sm:$0xff]  }
  0x53   :  { %v606_v38 = vld [vmem:[#allocation10 + $0x30] sm:$0xff]  }
  0x54   :  { %v468_v40 = vld [vmem:[%s908_s5] ss:$0 sm:$0xff]  ;;  %s736_s5 = smov [#allocation12]  }
  0x55   :  { %518 = vmatpush3.bf16.msra.mxu0 %v586_v3  ;;  %538 = vmatpush3.bf16.msra.mxu1 %v594_v8  ;;  %v477_v52 = vld [vmem:[%s910_s7] ss:$0 sm:$0xff]  ;;  %s445_s12 = sshll.u32 %s736_s5, 4  ;;  %s446_s12 = int_to_ptr.vmem [resolvable:$true] %s445_s12 }
  0x56   :  { %519 = vmatprep.subr.bf16.mxu0 %v734_v0  ;;  %539 = vmatprep.subr.bf16.mxu1 %v734_v0  ;;  %s696_s13 = scalar_lea.vmem %s446_s12, 256  ;;  %p701_p5 = scmp.lt.s32.totalorder %s446_s12, %s446_s12 }
  0x57   :  { %p697_p4 = scmp.ne.s32.totalorder %s446_s12, %s696_s13  ;;  %p702_p6 = scmp.lt.s32.totalorder %s696_s13, %s696_s13 }
  0x59   :  { %520 = vmatpush3.bf16.msra.mxu0 %v587_v5  ;;  %540 = vmatpush3.bf16.msra.mxu1 %v595_v10  ;;  %p703_p7 = por %p702_p6, %p701_p5 }
  0x5a   :  { %521 = vmatprep.subr.bf16.mxu0 %v734_v0  ;;  %541 = vmatprep.subr.bf16.mxu1 %v734_v0 }
  0x5b   :  { %p704_p8 = pnand %p703_p7, %p697_p4 }
  0x5d   :  { %522 = vmatpush3.bf16.msra.mxu0 %v588_v7  ;;  %542 = vmatpush3.bf16.msra.mxu1 %v596_v12 }
  0x5e   :  { %523 = vmatprep.subr.bf16.mxu0 %v734_v0  ;;  %543 = vmatprep.subr.bf16.mxu1 %v734_v0 }
  0x61   :  { %524 = vmatpush3.bf16.msra.mxu0 %v589_v9  ;;  %544 = vmatpush3.bf16.msra.mxu1 %v597_v16 }
  0x62   :  { %525 = vmatprep.subr.bf16.mxu0 %v734_v0  ;;  %545 = vmatprep.subr.bf16.mxu1 %v734_v0 }
  0x65   :  { %526 = vmatpush3.bf16.msra.mxu0 %v590_v11  ;;  %546 = vmatpush3.bf16.msra.mxu1 %v598_v18 }
  0x66   :  { %527 = vmatprep.subr.bf16.mxu0 %v734_v0  ;;  %547 = vmatprep.subr.bf16.mxu1 %v734_v0 }
  0x69   :  { %528 = vmatpush3.bf16.msra.mxu0 %v591_v13  ;;  %548 = vmatpush3.bf16.msra.mxu1 %v599_v19 }
  0x6a   :  { %553 = vmatprep.subr.bf16.mxu0 %v734_v0 }
  0x6c   :  { %530 = vmatmul.mubr.bf16.vlgmr.msra.gmra.mrb[0].mxu0 %v87_v17 }
  0x6d   :  { %569 = vmatprep.mubr.msk.bf16.mxu0 %vm735_vm0, %v734_v0  ;;  %554 = vmatpush3.bf16.msra.mxu0 %v600_v20 }
  0x6e   :  { %555 = vmatprep.subr.bf16.mxu0 %v734_v0 }
  0x71   :  { %556 = vmatpush3.bf16.msra.mxu0 %v601_v21 }
  0x72   :  { %557 = vmatprep.subr.bf16.mxu0 %v734_v0 }
  0x75   :  { %558 = vmatpush3.bf16.msra.mxu0 %v602_v22 }
  0x76   :  { %559 = vmatprep.subr.bf16.mxu0 %v734_v0 }
  0x79   :  { %560 = vmatpush3.bf16.msra.mxu0 %v603_v23 }
  0x7a   :  { %561 = vmatprep.subr.bf16.mxu0 %v734_v0 }
  0x7d   :  { %562 = vmatpush3.bf16.msra.mxu0 %v604_v24 }
  0x7e   :  { %563 = vmatprep.subr.bf16.mxu0 %v734_v0 }
  0x81   :  { %564 = vmatpush3.bf16.msra.mxu0 %v605_v25 }
  0x82   :  { %565 = vmatprep.subr.bf16.mxu0 %v734_v0 }
  0x85   :  { %566 = vmatpush3.bf16.msra.mxu0 %v606_v38 }
  0x86   :  { %567 = vmatprep.subr.bf16.mxu0 %v734_v0 }
  0x89   :  { %568 = vmatpush3.bf16.msra.mxu0 %v607_v39 }
 0x13f   :  { %v193_v27 = vpop.f32.mrb[0].mxu0 }
 0x140   :  { %v194_v28 = vadd.f32 %v459_v26, %v193_v27  ;;  %v531_v29 = vpop.f32.mrb[1].mxu0 }
 0x141   :  { %v196_v30 = vpop.f32.mrb[2].mxu0 }
 0x142   :  { %v202_v31 = vmul.f32 0.01, %v194_v28  ;;  %v197_v32 = vadd.f32 %v459_v26, %v196_v30  ;;  %v532_v33 = vpop.f32.mrb[3].mxu0  ;;  %vm200_vm1 = vcmp.gt.f32.partialorder %v194_v28, 0.0 }
 0x144   :  { %vm201_vm2 = vcmp.gt.f32.partialorder %v197_v32, 0.0  ;;  %v203_v34 = vmul.f32 0.01, %v197_v32  ;;  %v204_v35 = vsel %vm200_vm1, %v194_v28, %v202_v31 }
 0x146   :  { %v205_v36 = vsel %vm201_vm2, %v197_v32, %v203_v34 }
 0x147   :  { %v206_v37 = vpack.c.bf16 %v205_v36, %v204_v35 }
 0x149   :  { %550 = vmatmul.mubr.bf16.vlgmr.msra.gmra.mrb[0].mxu1 %v206_v37 }
 0x21c   :  { %v312_v41 = vpop.f32.mrb[0].mxu1 }
 0x21d   :  { %v313_v42 = vadd.f32 %v468_v40, %v312_v41  ;;  %v551_v43 = vpop.f32.mrb[1].mxu1 }
 0x21e   :  { %v315_v44 = vpop.f32.mrb[2].mxu1 }
 0x21f   :  { %v321_v45 = vmul.f32 0.01, %v313_v42  ;;  %v316_v46 = vadd.f32 %v468_v40, %v315_v44  ;;  %v552_v47 = vpop.f32.mrb[3].mxu1  ;;  %vm319_vm3 = vcmp.gt.f32.partialorder %v313_v42, 0.0 }
 0x221   :  { %vm320_vm4 = vcmp.gt.f32.partialorder %v316_v46, 0.0  ;;  %v322_v48 = vmul.f32 0.01, %v316_v46  ;;  %v323_v49 = vsel %vm319_vm3, %v313_v42, %v321_v45 }
 0x223   :  { %v324_v50 = vsel %vm320_vm4, %v316_v46, %v322_v48 }
 0x224   :  { %v325_v51 = vpack.c.bf16 %v324_v50, %v323_v49 }
 0x226   :  { %570 = vmatmul.mubr.bf16.vlgmr.msra.gmra.mrb[4].mxu0 %v325_v51 }
 0x2f9   :  { %v431_v53 = vpop.f32.mrb[4].mxu0 }
 0x2fa   :  { %v432_v54 = vadd.f32 %v477_v52, %v431_v53  ;;  %v571_v55 = vpop.f32.mrb[5].mxu0 }
 0x2fb   :  { %v434_v56 = vpop.f32.mrb[6].mxu0 }
 0x2fc   :  { %438 = vst [vmem:[#allocation12] sm:$0xff] %v432_v54  ;;  %v435_v57 = vadd.f32 %v477_v52, %v434_v56  ;;  %v572_v58 = vpop.f32.mrb[7].mxu0 }
 0x2fe   :  { %439 = vst [vmem:[#allocation12 + $0x8] sm:$0xff] %v435_v57 }
 0x2ff   :  { %707 = shalt.err (!%p704_p8)
}
 0x300   :  { %s708_s17 = scalar_lea.hbm %s911_s8, 256 }
 0x301   :  { %p709_p9 = scmp.ne.s32.totalorder %s911_s8, %s708_s17  ;;  %p712_p10 = scmp.lt.u32.totalorder %s708_s17, %s911_s8 }
 0x303   :  { %p714_p11 = pnand %p712_p10, %p709_p9 }
 0x305   :  { %717 = shalt.err (!%p714_p11)
}
 0x306   :  { %451 = dma.vmem_to_hbm [thread:$0]  %s446_s12, 256, %s911_s8, [#allocation6], %s730_s2, %s730_s2, %s731_s27  }
 0x307   :  { %724 = dma.done.wait [#allocation6], 256  }
 0x308   :  { %725 = vsyncadd [#allocation6], 4294967040 }
 0x309   :  { %455 = vsyncpa [#allocation5], 1 }
 0x30a   :  { %456 = vsyncpa [#allocation8], 1 }
 0x30b   :  { %457 = vsyncpa [#allocation11], 1 }
 0x30c   :  { %458 = vsyncpa [#allocation6], 1 }

</bundles_post_ra>
